<compile_context>
chip_gen: v6e
topology: v6e:2x2x1
jax: 0.10.0
libtpu: 0.0.40
codegen_flags: <defaults>
</compile_context>

<pallas_src>
import jax
import jax.numpy as jnp
from jax.experimental import pallas as pl
from jax.experimental.pallas import tpu as pltpu


# --------------------------------------------------------------------------
# Pass 1: im2row conv (+bias) + per-image channel statistics
# --------------------------------------------------------------------------
def _conv_stats_kernel(r_ref, a_ref, b_ref, conv_ref, stats_ref):
    # r_ref    : (H, KC)       im2row rows of one image (KC = K*(Wx*Cb + W*Ce))
    # a_ref    : (KC, W*Cout)  Toeplitz/im2row-folded conv weights
    # b_ref    : (1, W*Cout)   bias tiled over W
    # conv_ref : (H, W*Cout)   conv output tile (lane-dense)
    # stats_ref: (2, W*Cout)   row 0 = per-lane sum, row 1 = per-lane sum-of-sq
    acc = jnp.dot(r_ref[...], a_ref[...], preferred_element_type=jnp.float32)
    acc = acc + b_ref[...]
    conv_ref[...] = acc                       # single store of the tile
    ssum = jnp.sum(acc, axis=0, keepdims=True)
    ssq = jnp.sum(acc * acc, axis=0, keepdims=True)
    stats_ref[...] = jnp.concatenate([ssum, ssq], axis=0)


# --------------------------------------------------------------------------
# Pass 2: BatchNorm apply + ReLU (lane-dense elementwise, few big blocks)
# --------------------------------------------------------------------------
def _bn_relu_kernel(conv_ref, scale_ref, shift_ref, o_ref):
    o_ref[...] = jnp.maximum(conv_ref[...] * scale_ref[...] + shift_ref[...],
                             0.0)


# --------------------------------------------------------------------------
# Wrapper: PyTorch-layout (NCHW) in / out
# --------------------------------------------------------------------------
def decoder_forward(x_nchw, encode_nchw, weight_oikk, bias_o, kernel_size,
                    scale=2, eps=1e-5):
    """Pallas implementation of Decoder.forward (norm='batch', act='relu',
    mode='nearest')."""
    f32 = jnp.float32
    N, Cb, Hx, Wx = x_nchw.shape
    _, Ce, H, W = encode_nchw.shape
    assert Ce > 0, "c_encode == 0 path not implemented"
    assert H == scale * Hx and W == scale * Wx, "encode must be scale x larger"
    Cout = weight_oikk.shape[0]
    K = kernel_size
    pad_lo = (K - 1) // 2            # matches SameDimConv2d.get_pad (stride=1)
    pad_hi = (K - 1) - pad_lo
    WCout, WxCb, WCe = W * Cout, Wx * Cb, W * Ce
    RW = WxCb + WCe                  # concatenated row width (x | encode)
    KC = K * RW                      # im2row contraction depth

    x_nchw = x_nchw.astype(f32)
    encode_nchw = encode_nchw.astype(f32)
    weight = weight_oikk.astype(f32)
    bias = bias_o.astype(f32)

    # ---- im2row rows: height-upsample x, concat with encode, pad H, then
    #      gather the K row taps into the contraction dim (one take op). -----
    x_rows = jnp.transpose(x_nchw, (0, 2, 3, 1)).reshape(N, Hx, WxCb)
    x_rows = jnp.repeat(x_rows, scale, axis=1)                 # nearest, H
    e_rows = jnp.transpose(encode_nchw, (0, 2, 3, 1)).reshape(N, H, WCe)
    rows = jnp.concatenate([x_rows, e_rows], axis=-1)          # (N, H, RW)
    rows = jnp.pad(rows, ((0, 0), (pad_lo, pad_hi), (0, 0)))   # 'same' H pad
    tap_idx = (jnp.arange(H)[:, None] + jnp.arange(K)[None, :]).reshape(-1)
    R = jnp.take(rows, tap_idx, axis=1).reshape(N, H, KC)      # (N, H, 288)

    # ---- fold width-upsample + concat + width-pad + kw taps into a single
    #      (KC, W*Cout) weight matrix (structural-zero Toeplitz blocks) -------
    w_x = weight[:, :Cb]                        # (Cout, Cb, K, K)
    w_e = weight[:, Cb:]                        # (Cout, Ce, K, K)
    kw_i = jnp.arange(K)[:, None, None]         # (K,1,1)
    w_i = jnp.arange(W)[None, None, :]          # (1,1,W)
    ww = w_i + kw_i - pad_lo                    # upsampled width index per tap
    valid = (ww >= 0) & (ww < W)                # 'same' width padding mask
    we_i = jnp.arange(W)[None, :, None]
    S_e = ((we_i == ww) & valid).astype(f32)              # (K, W,  W)
    wx_i = jnp.arange(Wx)[None, :, None]
    S_x = ((wx_i == (ww // scale)) & valid).astype(f32)   # (K, Wx, W) nearest-W
    A_x = jnp.einsum('auw,ocha->hucwo', S_x, w_x).reshape(K, WxCb, WCout)
    A_e = jnp.einsum('auw,ocha->hucwo', S_e, w_e).reshape(K, WCe, WCout)
    A = jnp.concatenate([A_x, A_e], axis=1).reshape(KC, WCout)   # (288, 128)
    bias_row = jnp.tile(bias, W).reshape(1, WCout)

    cparams = pltpu.CompilerParams(dimension_semantics=("parallel",),
                                   vmem_limit_bytes=32 * 1024 * 1024)

    # ---- pass 1: one matmul per image + bias + packed per-image stats -------
    flops1 = 2 * N * H * KC * WCout
    bytes1 = 4 * (N * H * KC + KC * WCout + WCout
                  + N * H * WCout + 2 * N * WCout)
    conv3, stats = pl.pallas_call(
        _conv_stats_kernel,
        out_shape=(jax.ShapeDtypeStruct((N, H, WCout), f32),
                   jax.ShapeDtypeStruct((N, 2, WCout), f32)),
        grid=(N,),
        in_specs=[
            pl.BlockSpec((None, H, KC), lambda n: (n, 0, 0)),
            pl.BlockSpec((KC, WCout), lambda n: (0, 0)),
            pl.BlockSpec((1, WCout), lambda n: (0, 0)),
        ],
        out_specs=(
            pl.BlockSpec((None, H, WCout), lambda n: (n, 0, 0)),
            pl.BlockSpec((None, 2, WCout), lambda n: (n, 0, 0)),
        ),
        compiler_params=cparams,
        cost_estimate=pl.CostEstimate(flops=flops1, transcendentals=0,
                                      bytes_accessed=bytes1),
    )(R, A, bias_row)

    # ---- tiny cross-image/width reduction -> BatchNorm batch stats ----------
    Mtot = N * H * W
    sum_c = stats[:, 0, :].reshape(N, W, Cout).sum(axis=(0, 1))
    sq_c = stats[:, 1, :].reshape(N, W, Cout).sum(axis=(0, 1))
    mean = sum_c / Mtot
    var = jnp.maximum(sq_c / Mtot - mean * mean, 0.0)      # biased variance
    inv = jax.lax.rsqrt(var + eps)
    scale_row = jnp.tile(inv, W).reshape(1, WCout)
    shift_row = jnp.tile(-mean * inv, W).reshape(1, WCout)

    # ---- pass 2: normalize + ReLU on big flattened slabs --------------------
    NH = N * H
    g = 2 if NH % 16 == 0 else 1                 # keep 2 blocks for v7x cores
    rows_per = NH // g
    conv_flat = conv3.reshape(NH, WCout)
    flops2 = 3 * NH * WCout
    bytes2 = 4 * (2 * NH * WCout + 2 * WCout)
    out_flat = pl.pallas_call(
        _bn_relu_kernel,
        out_shape=jax.ShapeDtypeStruct((NH, WCout), f32),
        grid=(g,),
        in_specs=[
            pl.BlockSpec((rows_per, WCout), lambda i: (i, 0)),
            pl.BlockSpec((1, WCout), lambda i: (0, 0)),
            pl.BlockSpec((1, WCout), lambda i: (0, 0)),
        ],
        out_specs=pl.BlockSpec((rows_per, WCout), lambda i: (i, 0)),
        compiler_params=cparams,
        cost_estimate=pl.CostEstimate(flops=flops2, transcendentals=0,
                                      bytes_accessed=bytes2),
    )(conv_flat, scale_row, shift_row)

    out_nhwc = out_flat.reshape(N, H, W, Cout)
    return jnp.transpose(out_nhwc, (0, 3, 1, 2))             # back to NCHW


# --------------------------------------------------------------------------
# Pure-JAX reference (mirrors the PyTorch module) for validation
# --------------------------------------------------------------------------
def _reference_forward(x_nchw, encode_nchw, weight_oikk, bias_o, kernel_size,
                       scale=2, eps=1e-5):
    up = jnp.repeat(jnp.repeat(x_nchw, scale, axis=2), scale, axis=3)
    cat = jnp.concatenate([up, encode_nchw], axis=1)
    K = kernel_size
    pad_lo = (K - 1) // 2
    pad_hi = (K - 1) - pad_lo
    conv = jax.lax.conv_general_dilated(
        cat, weight_oikk, window_strides=(1, 1),
        padding=((pad_lo, pad_hi), (pad_lo, pad_hi)),
        dimension_numbers=("NCHW", "OIHW", "NCHW"))
    conv = conv + bias_o[None, :, None, None]
    mean = jnp.mean(conv, axis=(0, 2, 3), keepdims=True)
    var = jnp.mean((conv - mean) ** 2, axis=(0, 2, 3), keepdims=True)
    normed = (conv - mean) * jax.lax.rsqrt(var + eps)
    return jnp.maximum(normed, 0.0)


if __name__ == "__main__":
    # Decoder(c_back=4, c_encode=4, c_out=8, kernel_size=3)
    c_back, c_encode, c_out, ksize = 4, 4, 8, 3
    N, H0, W0 = 2, 8, 8                          # x spatial; encode is 16x16

    key = jax.random.PRNGKey(0)
    kx, ke, kw, kb = jax.random.split(key, 4)
    x = jax.random.normal(kx, (N, c_back, H0, W0), dtype=jnp.float32)
    encode = jax.random.normal(ke, (N, c_encode, 2 * H0, 2 * W0),
                               dtype=jnp.float32)
    weight = 0.1 * jax.random.normal(
        kw, (c_out, c_back + c_encode, ksize, ksize), dtype=jnp.float32)
    bias = 0.1 * jax.random.normal(kb, (c_out,), dtype=jnp.float32)

    fwd = jax.jit(decoder_forward,
                  static_argnames=("kernel_size", "scale", "eps"))
    out = fwd(x, encode, weight, bias, kernel_size=ksize, scale=2, eps=1e-5)
    out = jax.block_until_ready(out)

    ref = _reference_forward(x, encode, weight, bias, ksize)
    assert out.shape == (N, c_out, 2 * H0, 2 * W0), out.shape
    max_err = float(jnp.max(jnp.abs(out - ref)))
    assert jnp.allclose(out, ref, atol=1e-4, rtol=1e-4), \
        f"mismatch vs reference, max abs err {max_err}"

    print("KERNEL_OK")
</pallas_src>

<mosaic_0001>
module attributes {stable_mosaic.version = 11 : i64} {
  func.func @_conv_stats_kernel(%arg0: i32, %arg1: memref<1x16x288xf32, #tpu.memory_space<vmem>>, %arg2: memref<288x128xf32, #tpu.memory_space<vmem>>, %arg3: memref<1x128xf32, #tpu.memory_space<vmem>>, %arg4: memref<1x16x128xf32, #tpu.memory_space<vmem>>, %arg5: memref<1x2x128xf32, #tpu.memory_space<vmem>>) attributes {dimension_semantics = [#tpu.dimension_semantics<parallel>], iteration_bounds = array<i64: 2>, scalar_prefetch = 0 : i64, scratch_operands = 0 : i64, tpu.core_type = #tpu.core_type<tc>, window_params = [{transform_indices = @transform_0, window_bounds = array<i64: 1, 16, 288>}, {pipeline_mode = #tpu.pipeline_mode<synchronous>, transform_indices = @transform_1, window_bounds = array<i64: 288, 128>}, {pipeline_mode = #tpu.pipeline_mode<synchronous>, transform_indices = @transform_2, window_bounds = array<i64: 1, 128>}, {transform_indices = @transform_3, window_bounds = array<i64: 1, 16, 128>}, {transform_indices = @transform_4, window_bounds = array<i64: 1, 2, 128>}]} {
    %c0 = arith.constant 0 : index
    %c0_0 = arith.constant 0 : index
    %c0_1 = arith.constant 0 : index
    %0 = vector.load %arg1[%c0, %c0_0, %c0_1] : memref<1x16x288xf32, #tpu.memory_space<vmem>>, vector<1x16x288xf32>
    %1 = vector.shape_cast %0 : vector<1x16x288xf32> to vector<16x288xf32>
    %c0_2 = arith.constant 0 : index
    %c0_3 = arith.constant 0 : index
    %2 = vector.load %arg2[%c0_2, %c0_3] : memref<288x128xf32, #tpu.memory_space<vmem>>, vector<288x128xf32>
    %cst = arith.constant dense<0.000000e+00> : vector<16x128xf32>
    %3 = tpu.matmul %1, %2, %cst {dimension_numbers = #tpu.dot_dimension_numbers<[1], [0], [0], [1], [0, 0, 1, 1], [], []>} : vector<16x288xf32>, vector<288x128xf32>, vector<16x128xf32> -> vector<16x128xf32>
    %c0_4 = arith.constant 0 : index
    %c0_5 = arith.constant 0 : index
    %4 = vector.load %arg3[%c0_4, %c0_5] : memref<1x128xf32, #tpu.memory_space<vmem>>, vector<1x128xf32>
    %5 = vector.broadcast %4 : vector<1x128xf32> to vector<16x128xf32>
    %6 = arith.addf %3, %5 : vector<16x128xf32>
    %c0_6 = arith.constant 0 : index
    %c0_7 = arith.constant 0 : index
    %c0_8 = arith.constant 0 : index
    %7 = vector.load %arg4[%c0_6, %c0_7, %c0_8] : memref<1x16x128xf32, #tpu.memory_space<vmem>>, vector<1x16x128xf32>
    %8 = vector.shape_cast %7 : vector<1x16x128xf32> to vector<16x128xf32>
    %9 = vector.shape_cast %6 : vector<16x128xf32> to vector<1x16x128xf32>
    tpu.vector_store %arg4[%c0_6, %c0_7, %c0_8], %9 {strides = array<i32>} : memref<1x16x128xf32, #tpu.memory_space<vmem>>, vector<1x16x128xf32>,
    %cst_9 = arith.constant dense<0.000000e+00> : vector<128xf32>
    %10 = vector.multi_reduction <add>, %6, %cst_9 [0] : vector<16x128xf32> to vector<128xf32>
    %11 = vector.shape_cast %10 : vector<128xf32> to vector<1x128xf32>
    %12 = arith.mulf %6, %6 : vector<16x128xf32>
    %cst_10 = arith.constant dense<0.000000e+00> : vector<128xf32>
    %13 = vector.multi_reduction <add>, %12, %cst_10 [0] : vector<16x128xf32> to vector<128xf32>
    %14 = vector.shape_cast %13 : vector<128xf32> to vector<1x128xf32>
    %15 = tpu.concatenate %11, %14 in 0 : vector<1x128xf32>, vector<1x128xf32> -> vector<2x128xf32>
    %c0_11 = arith.constant 0 : index
    %c0_12 = arith.constant 0 : index
    %c0_13 = arith.constant 0 : index
    %16 = vector.load %arg5[%c0_11, %c0_12, %c0_13] : memref<1x2x128xf32, #tpu.memory_space<vmem>>, vector<1x2x128xf32>
    %17 = vector.shape_cast %16 : vector<1x2x128xf32> to vector<2x128xf32>
    %18 = vector.shape_cast %15 : vector<2x128xf32> to vector<1x2x128xf32>
    tpu.vector_store %arg5[%c0_11, %c0_12, %c0_13], %18 {strides = array<i32>} : memref<1x2x128xf32, #tpu.memory_space<vmem>>, vector<1x2x128xf32>,
    return
  }
  func.func @transform_0(%arg0: i32) -> (i32, i32, i32) {
    %c0_i32 = arith.constant 0 : i32
    %c0_i32_0 = arith.constant 0 : i32
    %c0_i32_1 = arith.constant 0 : i32
    return %arg0, %c0_i32, %c0_i32_0 : i32, i32, i32
  }
  func.func @transform_1(%arg0: i32) -> (i32, i32) {
    %c0_i32 = arith.constant 0 : i32
    %c0_i32_0 = arith.constant 0 : i32
    %c0_i32_1 = arith.constant 0 : i32
    return %c0_i32, %c0_i32_0 : i32, i32
  }
  func.func @transform_2(%arg0: i32) -> (i32, i32) {
    %c0_i32 = arith.constant 0 : i32
    %c0_i32_0 = arith.constant 0 : i32
    %c0_i32_1 = arith.constant 0 : i32
    return %c0_i32, %c0_i32_0 : i32, i32
  }
  func.func @transform_3(%arg0: i32) -> (i32, i32, i32) {
    %c0_i32 = arith.constant 0 : i32
    %c0_i32_0 = arith.constant 0 : i32
    %c0_i32_1 = arith.constant 0 : i32
    return %arg0, %c0_i32, %c0_i32_0 : i32, i32, i32
  }
  func.func @transform_4(%arg0: i32) -> (i32, i32, i32) {
    %c0_i32 = arith.constant 0 : i32
    %c0_i32_0 = arith.constant 0 : i32
    %c0_i32_1 = arith.constant 0 : i32
    return %arg0, %c0_i32, %c0_i32_0 : i32, i32, i32
  }
}

module attributes {stable_mosaic.version = 11 : i64} {
  func.func @_bn_relu_kernel(%arg0: i32, %arg1: memref<16x128xf32, #tpu.memory_space<vmem>>, %arg2: memref<1x128xf32, #tpu.memory_space<vmem>>, %arg3: memref<1x128xf32, #tpu.memory_space<vmem>>, %arg4: memref<16x128xf32, #tpu.memory_space<vmem>>) attributes {dimension_semantics = [#tpu.dimension_semantics<parallel>], iteration_bounds = array<i64: 2>, scalar_prefetch = 0 : i64, scratch_operands = 0 : i64, tpu.core_type = #tpu.core_type<tc>, window_params = [{transform_indices = @transform_0, window_bounds = array<i64: 16, 128>}, {pipeline_mode = #tpu.pipeline_mode<synchronous>, transform_indices = @transform_1, window_bounds = array<i64: 1, 128>}, {pipeline_mode = #tpu.pipeline_mode<synchronous>, transform_indices = @transform_2, window_bounds = array<i64: 1, 128>}, {transform_indices = @transform_3, window_bounds = array<i64: 16, 128>}]} {
    %c0 = arith.constant 0 : index
    %c0_0 = arith.constant 0 : index
    %0 = vector.load %arg1[%c0, %c0_0] : memref<16x128xf32, #tpu.memory_space<vmem>>, vector<16x128xf32>
    %c0_1 = arith.constant 0 : index
    %c0_2 = arith.constant 0 : index
    %1 = vector.load %arg2[%c0_1, %c0_2] : memref<1x128xf32, #tpu.memory_space<vmem>>, vector<1x128xf32>
    %2 = vector.broadcast %1 : vector<1x128xf32> to vector<16x128xf32>
    %3 = arith.mulf %0, %2 : vector<16x128xf32>
    %c0_3 = arith.constant 0 : index
    %c0_4 = arith.constant 0 : index
    %4 = vector.load %arg3[%c0_3, %c0_4] : memref<1x128xf32, #tpu.memory_space<vmem>>, vector<1x128xf32>
    %5 = vector.broadcast %4 : vector<1x128xf32> to vector<16x128xf32>
    %6 = arith.addf %3, %5 : vector<16x128xf32>
    %cst = arith.constant 0.000000e+00 : f32
    %7 = vector.broadcast %cst : f32 to vector<16x128xf32>
    %8 = arith.maximumf %6, %7 : vector<16x128xf32>
    %c0_5 = arith.constant 0 : index
    %c0_6 = arith.constant 0 : index
    %9 = vector.load %arg4[%c0_5, %c0_6] : memref<16x128xf32, #tpu.memory_space<vmem>>, vector<16x128xf32>
    tpu.vector_store %arg4[%c0_5, %c0_6], %8 {strides = array<i32>} : memref<16x128xf32, #tpu.memory_space<vmem>>, vector<16x128xf32>,
    return
  }
  func.func @transform_0(%arg0: i32) -> (i32, i32) {
    %c0_i32 = arith.constant 0 : i32
    %c0_i32_0 = arith.constant 0 : i32
    return %arg0, %c0_i32 : i32, i32
  }
  func.func @transform_1(%arg0: i32) -> (i32, i32) {
    %c0_i32 = arith.constant 0 : i32
    %c0_i32_0 = arith.constant 0 : i32
    %c0_i32_1 = arith.constant 0 : i32
    return %c0_i32, %c0_i32_0 : i32, i32
  }
  func.func @transform_2(%arg0: i32) -> (i32, i32) {
    %c0_i32 = arith.constant 0 : i32
    %c0_i32_0 = arith.constant 0 : i32
    %c0_i32_1 = arith.constant 0 : i32
    return %c0_i32, %c0_i32_0 : i32, i32
  }
  func.func @transform_3(%arg0: i32) -> (i32, i32) {
    %c0_i32 = arith.constant 0 : i32
    %c0_i32_0 = arith.constant 0 : i32
    return %arg0, %c0_i32 : i32, i32
  }
}

</mosaic_0001>

<bundles_post_ra>
// kernel: tile.18
= control target key start
LH: loop header
LB: loop body
LE: loop exit
PB: predicated region body
PF: predicated region fallthrough
CT: control target
= control target key end

     0   :  { %s28_s0 = inlined_call_operand.vmem [shape: f32[8], index: 0, kind: input, shape index: {}]   ;;  %s29_s1 = inlined_call_operand.vmem [shape: f32[16,8], index: 1, kind: output, shape index: {}]  }
   0x1   :  { %v4_v0 = vld [vmem:[%s28_s0] ss:$0 sm:$0xff] }
   0x2   :  { %5 = vst [vmem:[%s29_s1] sm:$0xff] %v4_v0  ;;  %8 = vst [vmem:[%s29_s1 + $0x8] sm:$0xff] %v4_v0 }

// kernel: tile.19
= control target key start
LH: loop header
LB: loop body
LE: loop exit
PB: predicated region body
PF: predicated region fallthrough
CT: control target
= control target key end

     0   :  { %s133_s10 = smov 120   ;;  %s134_s11 = smov 104   ;;  %vm3_vm0 = vcmask 64512   ;;  %vm9_vm1 = vcmask 1048512   ;;  %vm15_vm2 = vcmask 982912   ;;  %vm21_vm3 = vcmask 917312   ;;  %s209_s0 = inlined_call_operand.vmem [shape: f32[16,8], index: 0, kind: input, shape index: {}]   ;;  %s210_s1 = inlined_call_operand.vmem [shape: f32[1,128], index: 1, kind: output, shape index: {}]  }
   0x1   :  { %v103_v0 = vld [vmem:[%s209_s0 + $0xf] sm:$0x1]   ;;  %v105_v1 = vld [vmem:[%s209_s0 + $0xd] sm:$0x1]   ;;  %v104_v2 = vld [vmem:[%s209_s0 + $0xe] sm:$0x1]  }
   0x2   :  { %7 = vrot.lane.b32.xlu0 %v103_v0, %s133_s10  ;;  %19 = vrot.lane.b32.xlu1 %v105_v1, %s134_s11  ;;  %v106_v3 = vld [vmem:[%s209_s0 + $0xc] sm:$0x1]   ;;  %s135_s16 = smov 112   ;;  %s136_s17 = smov 96   ;;  %v107_v4 = vld [vmem:[%s209_s0 + $0xb] sm:$0x1]  }
   0x3   :  { %v108_v5 = vld [vmem:[%s209_s0 + $0xa] sm:$0x1]   ;;  %v2_v6 = vld [vmem:[%s209_s0] sm:$0x1]   ;;  %s137_s24 = smov 88   ;;  %s138_s25 = smov 80  }
   0x4   :  { %4 = vst.msk [vmem:[#allocation0] sm:$0x1] %vm3_vm0, %v2_v6   ;;  %v109_v7 = vld [vmem:[%s209_s0 + $0x9] sm:$0x1]   ;;  %v110_v8 = vld [vmem:[%s209_s0 + $0x8] sm:$0x1]  }
   0x5   :  { %s139_s30 = smov 72   ;;  %s140_s2 = smov 64   ;;  %v111_v9 = vld [vmem:[%s209_s0 + $0x7] sm:$0x1]   ;;  %v112_v10 = vld [vmem:[%s209_s0 + $0x6] sm:$0x1]  }
   0x6   :  { %13 = vrot.lane.b32.xlu0 %v104_v2, %s135_s16  ;;  %25 = vrot.lane.b32.xlu1 %v106_v3, %s136_s17  ;;  %s141_s7 = smov 56   ;;  %s142_s8 = smov 48   ;;  %v113_v11 = vld [vmem:[%s209_s0 + $0x5] sm:$0x1]   ;;  %v114_v12 = vld [vmem:[%s209_s0 + $0x4] sm:$0x1]  }
   0x7   :  { %s143_s13 = smov 40   ;;  %s144_s14 = smov 32   ;;  %v115_v13 = vld [vmem:[%s209_s0 + $0x3] sm:$0x1]   ;;  %v116_v14 = vld [vmem:[%s209_s0 + $0x2] sm:$0x1]  }
   0x8   :  { %s145_s19 = smov 24   ;;  %s146_s20 = smov 16   ;;  %v117_v15 = vld [vmem:[%s209_s0 + $0x1] sm:$0x1]   ;;  %vm27_vm4 = vcmask 851712   ;;  %vm33_vm5 = vcmask 786112  }
   0x9   :  { %s147_s0 = smov 8   ;;  %vm39_vm6 = vcmask 720512   ;;  %vm45_vm7 = vcmask 654912   ;;  %vm51_vm8 = vcmask 589312   ;;  %vm57_vm9 = vcmask 523712  }
   0xa   :  { %31 = vrot.lane.b32.xlu0 %v107_v4, %s137_s24  ;;  %37 = vrot.lane.b32.xlu1 %v108_v5, %s138_s25  ;;  %vm63_vm10 = vcmask 458112   ;;  %vm69_vm11 = vcmask 392512   ;;  %vm75_vm12 = vcmask 326912   ;;  %vm81_vm13 = vcmask 261312  }
   0xb   :  { %vm87_vm14 = vcmask 195712   ;;  %vm93_vm15 = vcmask 130112  }
   0xe   :  { %43 = vrot.lane.b32.xlu0 %v109_v7, %s139_s30  ;;  %49 = vrot.lane.b32.xlu1 %v110_v8, %s140_s2 }
  0x12   :  { %55 = vrot.lane.b32.xlu0 %v111_v9, %s141_s7  ;;  %61 = vrot.lane.b32.xlu1 %v112_v10, %s142_s8 }
  0x16   :  { %67 = vrot.lane.b32.xlu0 %v113_v11, %s143_s13  ;;  %73 = vrot.lane.b32.xlu1 %v114_v12, %s144_s14 }
  0x1a   :  { %79 = vrot.lane.b32.xlu0 %v115_v13, %s145_s19  ;;  %85 = vrot.lane.b32.xlu1 %v116_v14, %s146_s20 }
  0x1e   :  { %91 = vrot.lane.b32.xlu0 %v117_v15, %s147_s0 }
  0x74   :  { %v8_v16 = vpop.permute.xlu0 %7   ;;  %v20_v17 = vpop.permute.xlu1 %19  }
  0x75   :  { %10 = vst.msk [vmem:[#allocation0] sm:$0x1] %vm9_vm1, %v8_v16  }
  0x78   :  { %v14_v18 = vpop.permute.xlu0 %13   ;;  %v26_v19 = vpop.permute.xlu1 %25  }
  0x79   :  { %16 = vst.msk [vmem:[#allocation0] sm:$0x1] %vm15_vm2, %v14_v18  }
  0x7a   :  { %22 = vst.msk [vmem:[#allocation0] sm:$0x1] %vm21_vm3, %v20_v17  }
  0x7b   :  { %28 = vst.msk [vmem:[#allocation0] sm:$0x1] %vm27_vm4, %v26_v19  }
  0x7c   :  { %v32_v20 = vpop.permute.xlu0 %31   ;;  %v38_v21 = vpop.permute.xlu1 %37  }
  0x7d   :  { %34 = vst.msk [vmem:[#allocation0] sm:$0x1] %vm33_vm5, %v32_v20  }
  0x7e   :  { %40 = vst.msk [vmem:[#allocation0] sm:$0x1] %vm39_vm6, %v38_v21  }
  0x80   :  { %v44_v22 = vpop.permute.xlu0 %43   ;;  %v50_v23 = vpop.permute.xlu1 %49  }
  0x81   :  { %46 = vst.msk [vmem:[#allocation0] sm:$0x1] %vm45_vm7, %v44_v22  }
  0x82   :  { %52 = vst.msk [vmem:[#allocation0] sm:$0x1] %vm51_vm8, %v50_v23  }
  0x84   :  { %v56_v24 = vpop.permute.xlu0 %55   ;;  %v62_v25 = vpop.permute.xlu1 %61  }
  0x85   :  { %58 = vst.msk [vmem:[#allocation0] sm:$0x1] %vm57_vm9, %v56_v24  }
  0x86   :  { %64 = vst.msk [vmem:[#allocation0] sm:$0x1] %vm63_vm10, %v62_v25  }
  0x88   :  { %v68_v26 = vpop.permute.xlu0 %67   ;;  %v74_v27 = vpop.permute.xlu1 %73  }
  0x89   :  { %70 = vst.msk [vmem:[#allocation0] sm:$0x1] %vm69_vm11, %v68_v26  }
  0x8a   :  { %76 = vst.msk [vmem:[#allocation0] sm:$0x1] %vm75_vm12, %v74_v27  }
  0x8c   :  { %v80_v28 = vpop.permute.xlu0 %79   ;;  %v86_v29 = vpop.permute.xlu1 %85  }
  0x8d   :  { %82 = vst.msk [vmem:[#allocation0] sm:$0x1] %vm81_vm13, %v80_v28  }
  0x8e   :  { %88 = vst.msk [vmem:[#allocation0] sm:$0x1] %vm87_vm14, %v86_v29  }
  0x90   :  { %v92_v30 = vpop.permute.xlu0 %91  }
  0x91   :  { %94 = vst.msk [vmem:[#allocation0] sm:$0x1] %vm93_vm15, %v92_v30  }
  0x98   :  { %v99_v31 = vld [vmem:[#allocation0] sm:$0x1] }
  0x99   :  { %102 = vst [vmem:[%s210_s1] sm:$0x1] %v99_v31 }

// kernel: decoder_forward.2
= control target key start
LH: loop header
LB: loop body
LE: loop exit
PB: predicated region body
PF: predicated region fallthrough
CT: control target
= control target key end

     0   :  { %s634_s15 = smov 0   ;;  %s778_s0 = inlined_call_operand.vmem [shape: f32[2,16,288], index: 0, kind: input, shape index: {}]   ;;  %s779_s1 = inlined_call_operand.vmem [shape: f32[288,128], index: 1, kind: input, shape index: {}]   ;;  %s780_s2 = inlined_call_operand.vmem [shape: f32[1,128], index: 2, kind: input, shape index: {}]   ;;  %s781_s3 = inlined_call_operand.vmem [shape: f32[2,16,128], index: 3, kind: output, shape index: {0}]   ;;  %s782_s4 = inlined_call_operand.vmem [shape: f32[2,2,128], index: 4, kind: output, shape index: {1}]  }
   0x1 LB: > { %s522_s16 = sadd.s32 4294967295, %s607_s15   ;;  %p526_p0 = scmp.ge.s32.totalorder %s607_s15, 1  ;;  %s607_s15 = sphi %s634_s15, %s15_s15  }
   0x2   : > { %p165_p1 = scmp.lt.s32.totalorder %s607_s15, 3 }
   0x4   : > { %p166_p2 = pnand %p526_p0, %p165_p1 }
   0x5   : > { %p195_p3 = scmp.lt.s32.totalorder (!%p166_p2), %s522_s16, 1 }
   0x6   : > { %169 = sbr.rel (%p166_p2) target bundleno = 267 (0x10b), region = 32 }
   0xb   : > { %v246_v0 = vld [vmem:[%s779_s1 + $0xf8] sm:$0xff]  ;;  %v245_v2 = vld [vmem:[%s779_s1 + $0xf0] sm:$0xff]  ;;  %v244_v4 = vld [vmem:[%s779_s1 + $0xe8] sm:$0xff]  ;;  %s784_s16 = smov (!%p195_p3, %s522_s16), 1  ;;  %vm258_vm0 = vcmask 261120   ;;  %vm433_vm1 = vcmask 1040384  }
   0xc   : > { %v230_v1 = vld [vmem:[%s779_s1 + $0x78] sm:$0xff]  ;;  %537 = vmatprep.subr.mxu0 %v246_v0  ;;  %v229_v3 = vld [vmem:[%s779_s1 + $0x70] sm:$0xff]  ;;  %v228_v5 = vld [vmem:[%s779_s1 + $0x68] sm:$0xff]  ;;  %s592_s5 = smul.u32 48, %s784_s16  ;;  %s536_s25 = sshll.u32 %s784_s16, 4 }
   0xd   : > { %538 = vmatpush3.msra.mxu0 %v230_v1  ;;  %v243_v6 = vld [vmem:[%s779_s1 + $0xe0] sm:$0xff]  ;;  %v242_v8 = vld [vmem:[%s779_s1 + $0xd8] sm:$0xff]  ;;  %v241_v10 = vld [vmem:[%s779_s1 + $0xd0] sm:$0xff]  ;;  %s204_s28 = scalar_lea.vmem %s781_s3, %s536_s25 }
   0xe   : > { %539 = vmatprep.subr.mxu0 %v245_v2  ;;  %v227_v7 = vld [vmem:[%s779_s1 + $0x60] sm:$0xff]  ;;  %v226_v9 = vld [vmem:[%s779_s1 + $0x58] sm:$0xff]  ;;  %s681_s18 = scalar_lea.vmem %s778_s0, %s592_s5  ;;  %v225_v11 = vld [vmem:[%s779_s1 + $0x50] sm:$0xff] }
   0xf   : > { %540 = vmatpush3.msra.mxu0 %v229_v3  ;;  %v250_v12 = vld [vmem:[%s779_s1 + $0x118] sm:$0xff]  ;;  %v240_v13 = vld [vmem:[%s779_s1 + $0xc8] sm:$0xff]  ;;  %v249_v14 = vld [vmem:[%s779_s1 + $0x110] sm:$0xff] }
  0x10   : > { %541 = vmatprep.subr.mxu0 %v244_v4  ;;  %581 = vmatprep.subr.mxu1 %v250_v12  ;;  %v224_v15 = vld [vmem:[%s779_s1 + $0x48] sm:$0xff]  ;;  %v239_v17 = vld [vmem:[%s779_s1 + $0xc0] sm:$0xff]  ;;  %v238_v20 = vld [vmem:[%s779_s1 + $0xb8] sm:$0xff] }
  0x11   : > { %542 = vmatpush3.msra.mxu0 %v228_v5  ;;  %582 = vmatpush3.msra.mxu1 %v250_v12  ;;  %v210_v16 = vld [vmem:[%s681_s18 + $0x8] sm:$0xff]  ;;  %v223_v19 = vld [vmem:[%s779_s1 + $0x40] sm:$0xff]  ;;  %v222_v22 = vld [vmem:[%s779_s1 + $0x38] sm:$0xff] }
  0x12   : > { %543 = vmatprep.subr.mxu0 %v243_v6  ;;  %583 = vmatprep.subr.mxu1 %v249_v14  ;;  %v248_v18 = vld [vmem:[%s779_s1 + $0x108] sm:$0xff]  ;;  %v247_v21 = vld [vmem:[%s779_s1 + $0x100] sm:$0xff]  ;;  %v237_v23 = vld [vmem:[%s779_s1 + $0xb0] sm:$0xff] }
  0x13   : > { %544 = vmatpush3.msra.mxu0 %v227_v7  ;;  %329 = vmatprep.mubr.f32.mxu0 %v210_v16  ;;  %v211_v24 = vld [vmem:[%s681_s18 + $0x10] sm:$0xff]  ;;  %v214_v26 = vld [vmem:[%s681_s18 + $0x28] sm:$0xff]  ;;  %v235_v29 = vld [vmem:[%s779_s1 + $0xa0] sm:$0xff] }
  0x14   : > { %545 = vmatprep.subr.mxu0 %v242_v8  ;;  %584 = vmatpush3.msra.mxu1 %v249_v14  ;;  %v221_v25 = vld [vmem:[%s779_s1 + $0x30] sm:$0xff]  ;;  %v236_v27 = vld [vmem:[%s779_s1 + $0xa8] sm:$0xff]  ;;  %v219_v30 = vld [vmem:[%s779_s1 + $0x20] sm:$0xff] }
  0x15   : > { %546 = vmatpush3.msra.mxu0 %v226_v9  ;;  %585 = vmatprep.subr.mxu1 %v248_v18  ;;  %v220_v28 = vld [vmem:[%s779_s1 + $0x28] sm:$0xff]  ;;  %v234_v31 = vld [vmem:[%s779_s1 + $0x98] sm:$0xff]  ;;  %v233_v33 = vld [vmem:[%s779_s1 + $0x90] sm:$0xff] }
  0x16   : > { %547 = vmatprep.subr.mxu0 %v241_v10  ;;  %586 = vmatpush3.msra.mxu1 %v248_v18  ;;  %v218_v32 = vld [vmem:[%s779_s1 + $0x18] sm:$0xff]  ;;  %v217_v34 = vld [vmem:[%s779_s1 + $0x10] sm:$0xff]  ;;  %v232_v35 = vld [vmem:[%s779_s1 + $0x88] sm:$0xff] }
  0x17   : > { %548 = vmatpush3.msra.mxu0 %v225_v11  ;;  %587 = vmatprep.subr.mxu1 %v247_v21  ;;  %v216_v36 = vld [vmem:[%s779_s1 + $0x8] sm:$0xff]  ;;  %v231_v37 = vld [vmem:[%s779_s1 + $0x80] sm:$0xff]  ;;  %v212_v41 = vld [vmem:[%s681_s18 + $0x18] sm:$0xff] }
  0x18   : > { %549 = vmatprep.subr.mxu0 %v240_v13  ;;  %588 = vmatpush3.msra.mxu1 %v247_v21  ;;  %v215_v38 = vld [vmem:[%s779_s1] sm:$0xff] }
  0x19   : > { %550 = vmatpush3.msra.mxu0 %v224_v15  ;;  %589 = vmatprep.mubr.msk.f32.mxu1 %vm258_vm0, %v211_v24  ;;  %v209_v39 = vld [vmem:[%s681_s18] sm:$0xff] }
  0x1a   : > { %551 = vmatprep.subr.mxu0 %v239_v17  ;;  %590 = vmatmul.mubr.msk.f32.vlgmr.msra.gmra.mxu1 %vm258_vm0, %v214_v26  ;;  %v213_v40 = vld [vmem:[%s681_s18 + $0x20] sm:$0xff]  ;;  %s530_s18 = sshll.u32 %s784_s16, 1 }
  0x1b   : > { %552 = vmatpush3.msra.mxu0 %v223_v19  ;;  %v531_v45 = vld [vmem:[%s780_s2] ss:$0 sm:$0xff]  ;;  %s208_s5 = scalar_lea.vmem %s782_s4, %s530_s18 }
  0x1c   : > { %553 = vmatprep.subr.mxu0 %v238_v20 }
  0x1d   : > { %554 = vmatpush3.msra.mxu0 %v222_v22 }
  0x1e   : > { %555 = vmatprep.subr.mxu0 %v237_v23 }
  0x1f   : > { %556 = vmatpush3.msra.mxu0 %v221_v25 }
  0x20   : > { %557 = vmatprep.subr.mxu0 %v236_v27 }
  0x21   : > { %558 = vmatpush3.msra.mxu0 %v220_v28 }
  0x22   : > { %559 = vmatprep.subr.mxu0 %v235_v29 }
  0x23   : > { %560 = vmatpush3.msra.mxu0 %v219_v30 }
  0x24   : > { %561 = vmatprep.subr.mxu0 %v234_v31 }
  0x25   : > { %562 = vmatpush3.msra.mxu0 %v218_v32 }
  0x26   : > { %563 = vmatprep.subr.mxu0 %v233_v33 }
  0x27   : > { %564 = vmatpush3.msra.mxu0 %v217_v34 }
  0x28   : > { %565 = vmatprep.subr.mxu0 %v232_v35 }
  0x29   : > { %566 = vmatpush3.msra.mxu0 %v216_v36 }
  0x2a   : > { %567 = vmatprep.subr.mxu0 %v231_v37 }
  0x2b   : > { %568 = vmatpush3.msra.mxu0 %v215_v38 }
  0x2c   : > { %330 = vmatmul.mubr.f32.vlgmr.msra.gmra.mxu0 %v209_v39 }
  0x2d   : > { %334 = vmatprep.mubr.f32.mxu0 %v213_v40 }
  0x30   : > { %335 = vmatmul.mubr.f32.gmra.mxu0 %v212_v41 }
  0xda   : > { %v591_v43 = vpop.f32.mrf.mxu1 }
  0xdc   : > { %v406_v48 = vpop.f32.mrf.mxu1 }
  0xec   : > { %v569_v42 = vpop.f32.mrf.mxu0 }
  0xee   : > { %v570_v44 = vpop.f32.mrf.mxu0 }
  0xef   : > { %v571_v46 = vadd.f32 %v570_v44, %v569_v42 }
  0xf0   : > { %v572_v47 = vpop.f32.mrf.mxu0 }
  0xf1   : > { %v332_v49 = vadd.f32 %v571_v46, %v531_v45 }
  0xf2   : > { %v573_v50 = vpop.f32.mrf.mxu0 }
  0xf3   : > { %v574_v51 = vadd.f32 %v573_v50, %v572_v47  ;;  %v407_v52 = vadd.f32 %v406_v48, %v332_v49 }
  0xf5   : > { %v337_v53 = vadd.f32 %v574_v51, %v531_v45  ;;  %415 = vst [vmem:[%s204_s28] sm:$0xff] %v407_v52  ;;  %v424_v56 = vmul.f32 %v407_v52, %v407_v52 }
  0xf7   : > { %v412_v54 = vadd.f32 %v591_v43, %v337_v53 }
  0xf9   : > { %416 = vst [vmem:[%s204_s28 + $0x8] sm:$0xff] %v412_v54  ;;  %v417_v55 = vadd.f32 %v412_v54, %v407_v52  ;;  %v425_v57 = vmul.f32 %v412_v54, %v412_v54 }
  0xfb   : > { %v418_v58 = vrot.slane %v417_v55, 4  ;;  %v426_v59 = vadd.f32 %v425_v57, %v424_v56 }
  0xfd   : > { %v419_v60 = vadd.f32 %v418_v58, %v417_v55  ;;  %v427_v61 = vrot.slane %v426_v59, 4 }
  0xff   : > { %v420_v62 = vrot.slane %v419_v60, 2  ;;  %v428_v63 = vadd.f32 %v427_v61, %v426_v59 }
 0x101   : > { %v421_v0 = vadd.f32 %v420_v62, %v419_v60  ;;  %v429_v1 = vrot.slane %v428_v63, 2 }
 0x103   : > { %v422_v2 = vrot.slane %v421_v0, 1  ;;  %v430_v3 = vadd.f32 %v429_v1, %v428_v63 }
 0x105   : > { %v431_v4 = vrot.slane %v430_v3, 1  ;;  %v423_v5 = vadd.f32 %v422_v2, %v421_v0 }
 0x107   : > { %v432_v6 = vadd.f32 %v431_v4, %v430_v3 }
 0x109   : > { %v434_v7 = vsel %vm433_vm1, %v423_v5, %v432_v6 }
 0x10a   : > { %435 = vst [vmem:[%s208_s5] sm:$0x3] %v434_v7 }
 0x10b PF: > { %s15_s15 = sadd.s32 1, %s607_s15  }
 0x10c   : > { %p12_p4 = scmp.ge.s32.totalorder %s15_s15, 4  }
 0x10e   :  { %14 = sbr.rel (!%p12_p4) target bundleno = 1 (0x1), region = 74 }

// kernel: decoder_forward.3
= control target key start
LH: loop header
LB: loop body
LE: loop exit
PB: predicated region body
PF: predicated region fallthrough
CT: control target
= control target key end

     0   :  { %s303_s12 = smov 0   ;;  %s320_s0 = inlined_call_operand.vmem [shape: f32[32,128], index: 0, kind: input, shape index: {}]   ;;  %s321_s1 = inlined_call_operand.vmem [shape: f32[1,128], index: 1, kind: input, shape index: {}]   ;;  %s322_s2 = inlined_call_operand.vmem [shape: f32[1,128], index: 2, kind: input, shape index: {}]   ;;  %s323_s3 = inlined_call_operand.vmem [shape: f32[32,128], index: 3, kind: output, shape index: {}]  }
   0x1 LB: > { %s254_s13 = sadd.s32 4294967295, %s281_s12   ;;  %p258_p0 = scmp.ge.s32.totalorder %s281_s12, 1  ;;  %s281_s12 = sphi %s303_s12, %s13_s12  }
   0x2   : > { %p138_p1 = scmp.lt.s32.totalorder %s281_s12, 3 }
   0x4   : > { %p139_p2 = pnand %p258_p0, %p138_p1 }
   0x5   : > { %s259_s14 = sshll.u32 (!%p139_p2), %s254_s13, 1 }
   0x6   : > { %142 = sbr.rel (%p139_p2) target bundleno = 22 (0x16), region = 32  ;;  %p163_p3 = scmp.lt.s32.totalorder (!%p139_p2), %s259_s14, 3 }
   0xb   : > { %s325_s14 = smov (!%p163_p3, %s259_s14), 3  ;;  %v263_v0 = vld [vmem:[%s321_s1] ss:$0 sm:$0xff] }
   0xc   : > { %s260_s15 = sshll.u32 %s325_s14, 3  ;;  %v264_v3 = vld [vmem:[%s322_s2] ss:$0 sm:$0xff] }
   0xd   : > { %s166_s20 = scalar_lea.vmem %s320_s0, %s260_s15  ;;  %s172_s25 = scalar_lea.vmem %s323_s3, %s260_s15 }
   0xe   : > { %v174_v1 = vld [vmem:[%s166_s20] sm:$0xff]  ;;  %v175_v2 = vld [vmem:[%s166_s20 + $0x8] sm:$0xff] }
   0xf   : > { %v183_v4 = vmul.f32 %v263_v0, %v174_v1  ;;  %v184_v5 = vmul.f32 %v263_v0, %v175_v2 }
  0x11   : > { %v192_v6 = vadd.f32 %v264_v3, %v183_v4  ;;  %v193_v7 = vadd.f32 %v264_v3, %v184_v5 }
  0x13   : > { %v194_v8 = vmax.f32 %v192_v6, 0.0  ;;  %v195_v9 = vmax.f32 %v193_v7, 0.0 }
  0x15   : > { %196 = vst [vmem:[%s172_s25] sm:$0xff] %v194_v8  ;;  %197 = vst [vmem:[%s172_s25 + $0x8] sm:$0xff] %v195_v9 }
  0x16 PF: > { %s13_s12 = sadd.s32 1, %s281_s12  }
  0x17   : > { %p10_p4 = scmp.ge.s32.totalorder %s13_s12, 4  }
  0x19   :  { %12 = sbr.rel (!%p10_p4) target bundleno = 1 (0x1), region = 62 }

</bundles_post_ra>
